<compile_context>
chip_gen: v7x
topology: tpu7x:2x2x1
jax: 0.10.0
libtpu: 0.0.40
codegen_flags: <defaults>
</compile_context>

<pallas_src>
import functools

import jax
import jax.numpy as jnp
from jax import lax
from jax.experimental import pallas as pl
from jax.experimental.pallas import tpu as pltpu


def _round_up(x, m):
    return ((x + m - 1) // m) * m


# ----------------------------------------------------------------------------
# Fused kernel: conv1(K=9*Cin matmul) + cond + SiLU -> conv2(K=9*HID matmul)
# One grid step == one batch element.  Lane dim = flattened padded spatial.
# ----------------------------------------------------------------------------
def _fused_kernel(p1_ref, cond_ref, mask_ref, w1_ref, w2_ref, b2_ref, o_ref,
                  *, Wq, Lh):
    # p1_ref  : (1, 9*Cin, Lh) bf16  conv1 im2col patches on the stride-Wq grid
    # cond_ref: (1, HID, 1)    f32   time/class conditioning (+ conv1 bias)
    # mask_ref: (1, Lh)        f32   1 at interior grid positions, 0 on pad ring
    # w1_ref  : (HID, 9*Cin)   bf16
    # w2_ref  : (Cout, 9*HID)  bf16
    # b2_ref  : (Cout, 1)      f32
    # o_ref   : (1, Cout, Lh)  f32   lane q = h*Wq + w holds output pixel (h, w)

    # ---- conv1: one MXU pass, N = Lh lanes ---------------------------------
    acc1 = jnp.dot(w1_ref[...], p1_ref[0],
                   preferred_element_type=jnp.float32)           # (HID, Lh) f32
    z = (acc1 + cond_ref[0]) * mask_ref[...]    # bias+cond, zero the pad ring
    h = z * jax.nn.sigmoid(z)                   # SiLU (f32); pad stays exactly 0

    # ---- conv2 im2col in-kernel: 9 constant lane shifts of h ---------------
    # On the stride-Wq flattened padded grid, tap (kh, kw) of output lane q is
    # h[q + kh*Wq + kw]; a shift by -off == roll by (Lh - off).  Wrapped lanes
    # only land beyond the last needed output lane, so they never contaminate
    # valid outputs.  Taps are stacked along sublanes (32-row aligned pieces).
    taps = []
    for kh in range(3):
        for kw in range(3):
            off = kh * Wq + kw
            t = h if off == 0 else pltpu.roll(h, Lh - off, axis=1)
            taps.append(t.astype(jnp.bfloat16))
    p2 = jnp.concatenate(taps, axis=0)                           # (9*HID, Lh)

    acc2 = jnp.dot(w2_ref[...], p2,
                   preferred_element_type=jnp.float32)           # (Cout, Lh)
    o_ref[0] = acc2 + b2_ref[...]


# ----------------------------------------------------------------------------
# Parameters (deterministic, in-script) and conditioning
# ----------------------------------------------------------------------------
def init_params(key, c_in=4, hidden=32, emb_dim=32, num_classes=10):
    ks = jax.random.split(key, 5)
    s = 0.05
    return {
        "class_table": s * jax.random.normal(ks[0], (num_classes, emb_dim), jnp.float32),
        "w1": s * jax.random.normal(ks[1], (emb_dim, emb_dim), jnp.float32),
        "b1": jnp.zeros((emb_dim,), jnp.float32),
        "wp": s * jax.random.normal(ks[2], (emb_dim, hidden), jnp.float32),
        "bp": jnp.zeros((hidden,), jnp.float32),
        "conv1_w": s * jax.random.normal(ks[3], (hidden, 3, 3, c_in), jnp.float32),
        "conv1_b": jnp.zeros((hidden,), jnp.float32),
        "conv2_w": s * jax.random.normal(ks[4], (c_in, 3, 3, hidden), jnp.float32),
        "conv2_b": jnp.zeros((c_in,), jnp.float32),
    }


def _sinusoidal(timestep, dim):
    half = dim // 2
    freqs = jnp.exp(-jnp.log(10000.0) * jnp.arange(half, dtype=jnp.float32) / half)
    args = timestep.astype(jnp.float32)[:, None] * freqs[None, :]
    return jnp.concatenate([jnp.sin(args), jnp.cos(args)], axis=-1)


def _conditioning(params, timestep, class_labels):
    """Time/class embedding MLP (hoisted to XLA), conv1 bias folded in."""
    emb_dim = params["w1"].shape[0]
    temb = _sinusoidal(timestep, emb_dim)
    cemb = params["class_table"][class_labels]
    h0 = temb @ params["w1"] + params["b1"][None, :] + cemb
    h0 = h0 * jax.nn.sigmoid(h0)
    emb = h0 @ params["wp"] + params["bp"][None, :]
    return emb + params["conv1_b"][None, :]                      # (B, HID)


# ----------------------------------------------------------------------------
# MusicDiffusion.forward equivalent (single fused Pallas call)
# ----------------------------------------------------------------------------
def music_diffusion_forward(params, image_nchw, timestep, class_labels):
    B, C, H, W = image_nchw.shape
    HID = params["conv1_w"].shape[0]
    K1, K2 = 9 * C, 9 * HID
    Wq = W + 1                          # padded-grid row stride (shared zero col)
    Hp = H + 2
    Lh = _round_up(Hp * Wq + 2, 128)    # flat padded-grid length, 128-aligned

    x = image_nchw.astype(jnp.float32)

    # ---- conditioning (XLA; trivial) ---------------------------------------
    cond = _conditioning(params, timestep, class_labels).reshape(B, HID, 1)

    # ---- conv1 im2col patches on the stride-Wq padded grid (XLA, read-once) -
    xp = jnp.pad(x, ((0, 0), (0, 0), (1, 1), (1, 1)))            # (B,C,H+2,W+2)
    taps = [xp[:, :, kh:kh + H, kw:kw + W]
            for kh in range(3) for kw in range(3)]
    p1 = jnp.concatenate(taps, axis=1)                           # (B,9C,H,W)
    p1 = jnp.pad(p1, ((0, 0), (0, 0), (1, 1), (1, 0)))           # (B,9C,Hp,Wq)
    p1 = p1.reshape(B, K1, Hp * Wq)
    p1 = jnp.pad(p1, ((0, 0), (0, 0), (0, Lh - Hp * Wq))).astype(jnp.bfloat16)

    # ---- interior mask: 1 at true HxW positions, 0 on the pad ring ---------
    mask = jnp.pad(jnp.ones((H, W), jnp.float32), ((1, 1), (1, 0)))
    mask = jnp.pad(mask.reshape(1, Hp * Wq), ((0, 0), (0, Lh - Hp * Wq)))

    w1m = params["conv1_w"].reshape(HID, K1).astype(jnp.bfloat16)
    w2m = params["conv2_w"].reshape(C, K2).astype(jnp.bfloat16)
    b2 = params["conv2_b"].reshape(C, 1).astype(jnp.float32)

    flops = int(2 * B * Lh * (HID * K1 + C * K2))
    transcendentals = int(B * HID * Lh)
    bytes_accessed = int(2 * B * K1 * Lh + 4 * B * HID + 4 * Lh
                         + 2 * (HID * K1 + C * K2) + 4 * C + 4 * B * C * Lh)

    kernel = functools.partial(_fused_kernel, Wq=Wq, Lh=Lh)
    out_flat = pl.pallas_call(
        kernel,
        out_shape=jax.ShapeDtypeStruct((B, C, Lh), jnp.float32),
        grid=(B,),
        in_specs=[
            pl.BlockSpec((1, K1, Lh), lambda b: (b, 0, 0)),      # conv1 patches
            pl.BlockSpec((1, HID, 1), lambda b: (b, 0, 0)),      # conditioning
            pl.BlockSpec((1, Lh), lambda b: (0, 0)),             # mask (resident)
            pl.BlockSpec((HID, K1), lambda b: (0, 0)),           # w1 (resident)
            pl.BlockSpec((C, K2), lambda b: (0, 0)),             # w2 (resident)
            pl.BlockSpec((C, 1), lambda b: (0, 0)),              # conv2 bias
        ],
        out_specs=pl.BlockSpec((1, C, Lh), lambda b: (b, 0, 0)),
        compiler_params=pltpu.CompilerParams(
            dimension_semantics=("parallel",),
            vmem_limit_bytes=32 * 1024 * 1024),
        cost_estimate=pl.CostEstimate(flops=flops,
                                      transcendentals=transcendentals,
                                      bytes_accessed=bytes_accessed),
    )(p1, cond, mask, w1m, w2m, b2)

    # Undo the stride-Wq flattening: lane q = h*Wq + w holds output pixel (h,w).
    out = out_flat[:, :, :H * Wq].reshape(B, C, H, Wq)[:, :, :, :W]
    return out                                                   # NCHW


# ----------------------------------------------------------------------------
# Pure-JAX reference (same model: bf16 matmul operands, f32 accumulation)
# ----------------------------------------------------------------------------
def reference_forward(params, image_nchw, timestep, class_labels):
    x = image_nchw.astype(jnp.float32)
    cond = _conditioning(params, timestep, class_labels)
    dn = ("NCHW", "OIHW", "NCHW")

    w1 = jnp.transpose(params["conv1_w"], (0, 3, 1, 2)).astype(jnp.bfloat16)
    h = lax.conv_general_dilated(x.astype(jnp.bfloat16), w1, (1, 1), "SAME",
                                 dimension_numbers=dn,
                                 preferred_element_type=jnp.float32)
    h = h + cond[:, :, None, None]
    h = h * jax.nn.sigmoid(h)

    w2 = jnp.transpose(params["conv2_w"], (0, 3, 1, 2)).astype(jnp.bfloat16)
    out = lax.conv_general_dilated(h.astype(jnp.bfloat16), w2, (1, 1), "SAME",
                                   dimension_numbers=dn,
                                   preferred_element_type=jnp.float32)
    return out + params["conv2_b"][None, :, None, None]


if __name__ == "__main__":
    key = jax.random.PRNGKey(0)
    k_par, k_img, k_t, k_cls = jax.random.split(key, 4)

    B, C, H, W = 2, 4, 16, 16
    params = init_params(k_par, c_in=C, hidden=32, emb_dim=32, num_classes=10)

    image = jax.random.normal(k_img, (B, C, H, W), jnp.float32)
    # training_step uses: timestep = 1 - rand(B)
    timestep = 1.0 - jax.random.uniform(k_t, (B,), jnp.float32)
    class_labels = jax.random.randint(k_cls, (B,), 0, 10)

    fwd = jax.jit(music_diffusion_forward)
    pred = jax.block_until_ready(fwd(params, image, timestep, class_labels))

    ref = reference_forward(params, image, timestep, class_labels)
    assert pred.shape == (B, C, H, W)
    assert bool(jnp.all(jnp.isfinite(pred)))
    # Both paths use bf16 matmul operands with f32 accumulation; differences
    # come only from summation order / rare bf16 tie-rounding of h.
    assert bool(jnp.allclose(pred, ref, rtol=1e-3, atol=1e-3)), "mismatch vs reference"

    print("KERNEL_OK")
</pallas_src>

<mosaic_0001>
module attributes {stable_mosaic.version = 11 : i64} {
  func.func @_fused_kernel(%arg0: i32, %arg1: memref<1x36x384xbf16, #tpu.memory_space<vmem>>, %arg2: memref<1x32x1xf32, #tpu.memory_space<vmem>>, %arg3: memref<1x384xf32, #tpu.memory_space<vmem>>, %arg4: memref<32x36xbf16, #tpu.memory_space<vmem>>, %arg5: memref<4x288xbf16, #tpu.memory_space<vmem>>, %arg6: memref<4x1xf32, #tpu.memory_space<vmem>>, %arg7: memref<1x4x384xf32, #tpu.memory_space<vmem>>) attributes {dimension_semantics = [#tpu.dimension_semantics<parallel>], iteration_bounds = array<i64: 2>, scalar_prefetch = 0 : i64, scratch_operands = 0 : i64, tpu.core_type = #tpu.core_type<tc>, window_params = [{transform_indices = @transform_0, window_bounds = array<i64: 1, 36, 384>}, {transform_indices = @transform_1, window_bounds = array<i64: 1, 32, 1>}, {pipeline_mode = #tpu.pipeline_mode<synchronous>, transform_indices = @transform_2, window_bounds = array<i64: 1, 384>}, {pipeline_mode = #tpu.pipeline_mode<synchronous>, transform_indices = @transform_3, window_bounds = array<i64: 32, 36>}, {pipeline_mode = #tpu.pipeline_mode<synchronous>, transform_indices = @transform_4, window_bounds = array<i64: 4, 288>}, {pipeline_mode = #tpu.pipeline_mode<synchronous>, transform_indices = @transform_5, window_bounds = array<i64: 4, 1>}, {transform_indices = @transform_6, window_bounds = array<i64: 1, 4, 384>}]} {
    %c0 = arith.constant 0 : index
    %c0_0 = arith.constant 0 : index
    %0 = vector.load %arg4[%c0, %c0_0] : memref<32x36xbf16, #tpu.memory_space<vmem>>, vector<32x36xbf16>
    %c0_1 = arith.constant 0 : index
    %c0_2 = arith.constant 0 : index
    %c0_3 = arith.constant 0 : index
    %1 = vector.load %arg1[%c0_1, %c0_2, %c0_3] : memref<1x36x384xbf16, #tpu.memory_space<vmem>>, vector<1x36x384xbf16>
    %2 = vector.shape_cast %1 : vector<1x36x384xbf16> to vector<36x384xbf16>
    %cst = arith.constant dense<0.000000e+00> : vector<32x384xf32>
    %3 = tpu.matmul %0, %2, %cst {dimension_numbers = #tpu.dot_dimension_numbers<[1], [0], [0], [1], [0, 0, 1, 1], [], []>} : vector<32x36xbf16>, vector<36x384xbf16>, vector<32x384xf32> -> vector<32x384xf32>
    %c0_4 = arith.constant 0 : index
    %c0_5 = arith.constant 0 : index
    %c0_6 = arith.constant 0 : index
    %4 = vector.load %arg2[%c0_4, %c0_5, %c0_6] : memref<1x32x1xf32, #tpu.memory_space<vmem>>, vector<1x32x1xf32>
    %5 = vector.shape_cast %4 : vector<1x32x1xf32> to vector<32x1xf32>
    %6 = vector.broadcast %5 : vector<32x1xf32> to vector<32x384xf32>
    %7 = arith.addf %3, %6 : vector<32x384xf32>
    %c0_7 = arith.constant 0 : index
    %c0_8 = arith.constant 0 : index
    %8 = vector.load %arg3[%c0_7, %c0_8] : memref<1x384xf32, #tpu.memory_space<vmem>>, vector<1x384xf32>
    %9 = vector.broadcast %8 : vector<1x384xf32> to vector<32x384xf32>
    %10 = arith.mulf %7, %9 : vector<32x384xf32>
    %11 = arith.negf %10 : vector<32x384xf32>
    %12 = math.exp %11 : vector<32x384xf32>
    %cst_9 = arith.constant 1.000000e+00 : f32
    %13 = vector.broadcast %cst_9 : f32 to vector<32x384xf32>
    %14 = arith.addf %13, %12 : vector<32x384xf32>
    %15 = arith.divf %13, %14 : vector<32x384xf32>
    %16 = arith.mulf %10, %15 : vector<32x384xf32>
    %17 = arith.truncf %16 : vector<32x384xf32> to vector<32x384xbf16>
    %c383_i32 = arith.constant 383 : i32
    %18 = tpu.dynamic_rotate %16 by %c383_i32 dim 1 : vector<32x384xf32>, i32 -> vector<32x384xf32>
    %19 = arith.truncf %18 : vector<32x384xf32> to vector<32x384xbf16>
    %c382_i32 = arith.constant 382 : i32
    %20 = tpu.dynamic_rotate %16 by %c382_i32 dim 1 : vector<32x384xf32>, i32 -> vector<32x384xf32>
    %21 = arith.truncf %20 : vector<32x384xf32> to vector<32x384xbf16>
    %c367_i32 = arith.constant 367 : i32
    %22 = tpu.dynamic_rotate %16 by %c367_i32 dim 1 : vector<32x384xf32>, i32 -> vector<32x384xf32>
    %23 = arith.truncf %22 : vector<32x384xf32> to vector<32x384xbf16>
    %c366_i32 = arith.constant 366 : i32
    %24 = tpu.dynamic_rotate %16 by %c366_i32 dim 1 : vector<32x384xf32>, i32 -> vector<32x384xf32>
    %25 = arith.truncf %24 : vector<32x384xf32> to vector<32x384xbf16>
    %c365_i32 = arith.constant 365 : i32
    %26 = tpu.dynamic_rotate %16 by %c365_i32 dim 1 : vector<32x384xf32>, i32 -> vector<32x384xf32>
    %27 = arith.truncf %26 : vector<32x384xf32> to vector<32x384xbf16>
    %c350_i32 = arith.constant 350 : i32
    %28 = tpu.dynamic_rotate %16 by %c350_i32 dim 1 : vector<32x384xf32>, i32 -> vector<32x384xf32>
    %29 = arith.truncf %28 : vector<32x384xf32> to vector<32x384xbf16>
    %c349_i32 = arith.constant 349 : i32
    %30 = tpu.dynamic_rotate %16 by %c349_i32 dim 1 : vector<32x384xf32>, i32 -> vector<32x384xf32>
    %31 = arith.truncf %30 : vector<32x384xf32> to vector<32x384xbf16>
    %c348_i32 = arith.constant 348 : i32
    %32 = tpu.dynamic_rotate %16 by %c348_i32 dim 1 : vector<32x384xf32>, i32 -> vector<32x384xf32>
    %33 = arith.truncf %32 : vector<32x384xf32> to vector<32x384xbf16>
    %34 = tpu.concatenate %17, %19, %21, %23, %25, %27, %29, %31, %33 in 0 : vector<32x384xbf16>, vector<32x384xbf16>, vector<32x384xbf16>, vector<32x384xbf16>, vector<32x384xbf16>, vector<32x384xbf16>, vector<32x384xbf16>, vector<32x384xbf16>, vector<32x384xbf16> -> vector<288x384xbf16>
    %c0_10 = arith.constant 0 : index
    %c0_11 = arith.constant 0 : index
    %35 = vector.load %arg5[%c0_10, %c0_11] : memref<4x288xbf16, #tpu.memory_space<vmem>>, vector<4x288xbf16>
    %cst_12 = arith.constant dense<0.000000e+00> : vector<4x384xf32>
    %36 = tpu.matmul %35, %34, %cst_12 {dimension_numbers = #tpu.dot_dimension_numbers<[1], [0], [0], [1], [0, 0, 1, 1], [], []>} : vector<4x288xbf16>, vector<288x384xbf16>, vector<4x384xf32> -> vector<4x384xf32>
    %c0_13 = arith.constant 0 : index
    %c0_14 = arith.constant 0 : index
    %37 = vector.load %arg6[%c0_13, %c0_14] : memref<4x1xf32, #tpu.memory_space<vmem>>, vector<4x1xf32>
    %38 = vector.broadcast %37 : vector<4x1xf32> to vector<4x384xf32>
    %39 = arith.addf %36, %38 : vector<4x384xf32>
    %c0_15 = arith.constant 0 : index
    %c0_16 = arith.constant 0 : index
    %c0_17 = arith.constant 0 : index
    %40 = vector.load %arg7[%c0_15, %c0_16, %c0_17] : memref<1x4x384xf32, #tpu.memory_space<vmem>>, vector<1x4x384xf32>
    %41 = vector.shape_cast %40 : vector<1x4x384xf32> to vector<4x384xf32>
    %42 = vector.shape_cast %39 : vector<4x384xf32> to vector<1x4x384xf32>
    tpu.vector_store %arg7[%c0_15, %c0_16, %c0_17], %42 {strides = array<i32>} : memref<1x4x384xf32, #tpu.memory_space<vmem>>, vector<1x4x384xf32>,
    return
  }
  func.func @transform_0(%arg0: i32) -> (i32, i32, i32) {
    %c0_i32 = arith.constant 0 : i32
    %c0_i32_0 = arith.constant 0 : i32
    %c0_i32_1 = arith.constant 0 : i32
    return %arg0, %c0_i32, %c0_i32_0 : i32, i32, i32
  }
  func.func @transform_1(%arg0: i32) -> (i32, i32, i32) {
    %c0_i32 = arith.constant 0 : i32
    %c0_i32_0 = arith.constant 0 : i32
    %c0_i32_1 = arith.constant 0 : i32
    return %arg0, %c0_i32, %c0_i32_0 : i32, i32, i32
  }
  func.func @transform_2(%arg0: i32) -> (i32, i32) {
    %c0_i32 = arith.constant 0 : i32
    %c0_i32_0 = arith.constant 0 : i32
    %c0_i32_1 = arith.constant 0 : i32
    return %c0_i32, %c0_i32_0 : i32, i32
  }
  func.func @transform_3(%arg0: i32) -> (i32, i32) {
    %c0_i32 = arith.constant 0 : i32
    %c0_i32_0 = arith.constant 0 : i32
    %c0_i32_1 = arith.constant 0 : i32
    return %c0_i32, %c0_i32_0 : i32, i32
  }
  func.func @transform_4(%arg0: i32) -> (i32, i32) {
    %c0_i32 = arith.constant 0 : i32
    %c0_i32_0 = arith.constant 0 : i32
    %c0_i32_1 = arith.constant 0 : i32
    return %c0_i32, %c0_i32_0 : i32, i32
  }
  func.func @transform_5(%arg0: i32) -> (i32, i32) {
    %c0_i32 = arith.constant 0 : i32
    %c0_i32_0 = arith.constant 0 : i32
    %c0_i32_1 = arith.constant 0 : i32
    return %c0_i32, %c0_i32_0 : i32, i32
  }
  func.func @transform_6(%arg0: i32) -> (i32, i32, i32) {
    %c0_i32 = arith.constant 0 : i32
    %c0_i32_0 = arith.constant 0 : i32
    %c0_i32_1 = arith.constant 0 : i32
    return %arg0, %c0_i32, %c0_i32_0 : i32, i32, i32
  }
}

</mosaic_0001>

<bundles_post_ra>
// kernel: music_diffusion_forward.1
= control target key start
LH: loop header
LB: loop body
LE: loop exit
PB: predicated region body
PF: predicated region fallthrough
CT: control target
= control target key end

     0   :  { %s1688_s21 = smov 0   ;;  %s2325_s0 = inlined_call_operand.vmem [shape: bf16[2,36,384], index: 0, kind: input, shape index: {}]   ;;  %s2326_s1 = inlined_call_operand.vmem [shape: f32[2,32,1], index: 1, kind: input, shape index: {}]   ;;  %s2327_s2 = inlined_call_operand.vmem [shape: f32[1,384], index: 2, kind: input, shape index: {}]   ;;  %s2328_s3 = inlined_call_operand.vmem [shape: bf16[32,36], index: 3, kind: input, shape index: {}]   ;;  %s2329_s4 = inlined_call_operand.vmem [shape: bf16[4,288], index: 4, kind: input, shape index: {}]   ;;  %s2330_s5 = inlined_call_operand.vmem [shape: f32[4,1], index: 5, kind: input, shape index: {}]   ;;  %s2331_s6 = inlined_call_operand.vmem [shape: f32[2,4,384], index: 6, kind: output, shape index: {}]  }
   0x1 LB: > { %s1210_s22 = sadd.s32 4294967295, %s1639_s21   ;;  %p1214_p0 = scmp.ge.s32.totalorder %s1639_s21, 1  ;;  %s1639_s21 = sphi %s1688_s21, %s16_s21  }
   0x2   : > { %p222_p1 = scmp.lt.s32.totalorder %s1639_s21, 3 }
   0x4   : > { %p223_p2 = pnand %p1214_p0, %p222_p1 }
   0x5   : > { %p257_p3 = scmp.lt.s32.totalorder (!%p223_p2), %s1210_s22, 1  ;;  %v2332_v0 = vmov (!%p223_p2), 0   ;;  %vm368_vm0 = vcmask (!%p223_p2), 1041408   ;;  %v1579_v14 = vld [vmem:[%s2328_s3] sm:$0xff] (!%p223_p2)   ;;  %vm361_vm1 = vcmask (!%p223_p2), 293888   ;;  %v1581_v17 = vld [vmem:[%s2328_s3 + $0x8] sm:$0xff] (!%p223_p2)   ;;  %v482_v19 = vlaneseq (!%p223_p2) }
   0x6   : > { %226 = sbr.rel (%p223_p2) target bundleno = 719 (0x2cf), region = 44  ;;  %410 = vmatprep.mubr.bf16.mxu1 (!%p223_p2), %v2332_v0  ;;  %1329 = vset.pattern.permute.xlu0 (!%p223_p2), %v2332_v0  ;;  %v480_v23 = vld [vmem:[%s2327_s2] sm:$0x7] (!%p223_p2)  ;;  %s1642_s13 = smov (!%p223_p2), 127   ;;  %vm1652_vm10 = vmmov (!%p223_p2), 0   ;;  %vm971_vm11 = vcmask (!%p223_p2), 261120  }
   0x7   : > { %1330 = vset.pattern.permute.xlu1 (!%p223_p2), %v2332_v0  ;;  %v1731_v20 = vshrl.u32 (!%p223_p2), %v482_v19, 7  ;;  %s1643_s14 = smov (!%p223_p2), 126   ;;  %s1644_s15 = smov (!%p223_p2), 111  }
   0x8   : > { %s1645_s16 = smov (!%p223_p2), 110   ;;  %s1646_s17 = smov (!%p223_p2), 109  }
   0x9   : > { %v484_v22 = vsub.s32 (!%p223_p2), 0, %v1731_v20  ;;  %v488_v24 = vsub.s32 (!%p223_p2), 1, %v1731_v20  ;;  %v492_v54 = vsub.s32 (!%p223_p2), 2, %v1731_v20  ;;  %s1647_s18 = smov (!%p223_p2), 94   ;;  %s1648_s19 = smov (!%p223_p2), 93  }
   0xb   : > { %v485_v25 = vrot.slane (!%p223_p2), %v480_v23, %v484_v22  ;;  %v489_v27 = vrot.slane (!%p223_p2), %v480_v23, %v488_v24  ;;  %v493_v62 = vrot.slane (!%p223_p2), %v480_v23, %v492_v54 }
   0xd   : > { %s2355_s22 = smov (!%p257_p3, %s1210_s22), 1 }
   0xe   : > { %s1307_s23 = smul.u32 60, %s2355_s22  ;;  %s1251_s24 = sshll.u32 %s2355_s22, 5 }
   0xf   : > { %s266_s27 = scalar_lea.vmem %s2326_s1, %s1251_s24  ;;  %s1650_s24 = smov 92  }
  0x10   : > { %s1709_s30 = scalar_lea.vmem %s2325_s0, %s1307_s23  ;;  %v287_v1 = vld [vmem:[%s266_s27] sm:$0xff]  ;;  %v289_v2 = vld [vmem:[%s266_s27 + $0x10] sm:$0xff]  ;;  %v288_v3 = vld [vmem:[%s266_s27 + $0x8] sm:$0xff] }
  0x11   : > { %v1571_v4 = vld [vmem:[%s1709_s30 + $0x4] ss:$12 sps:$4 sm:$0xff]   ;;  %293 = vperm.xlu0 %1329, %v287_v1   ;;  %303 = vperm.xlu1 %1330, %v289_v2   ;;  %v1573_v5 = vld [vmem:[%s1709_s30] ss:$12 sps:$4 sm:$0xff]   ;;  %v1574_v6 = vld [vmem:[%s1709_s30 + $0x1c] ss:$12 sps:$4 sm:$0xff]  }
  0x12   : > { %378 = vmatprep.subr.bf16.mxu1 %v1571_v4  ;;  %v285_v7 = vld [vmem:[%s1709_s30 + $0x30] sm:$0x33]  ;;  %v1576_v8 = vld [vmem:[%s1709_s30 + $0x18] ss:$12 sps:$4 sm:$0xff]   ;;  %v1582_v15 = vld [vmem:[%s1709_s30 + $0x20] ss:$12 sps:$4 sm:$0xff]  }
  0x13   : > { %379 = vmatpush1.bf16.msra.mxu1 %v1573_v5  ;;  %v1228_v9 = vcombine.high %v285_v7, %v285_v7  ;;  %v1227_v10 = vcombine.low %v285_v7, %v285_v7  ;;  %v290_v11 = vld [vmem:[%s266_s27 + $0x18] sm:$0xff]  ;;  %v1580_v13 = vld [vmem:[%s1709_s30 + $0x8] ss:$12 sps:$4 sm:$0xff]   ;;  %s1308_s27 = smul.u32 12, %s2355_s22 }
  0x14   : > { %380 = vmatprep.subr.bf16.mxu1 %v1574_v6  ;;  %v1583_v16 = vld [vmem:[%s1709_s30 + $0x38] ss:$0 sps:$4 sm:$0x33]  }
  0x15   : > { %298 = vperm.xlu0 %1329, %v288_v3   ;;  %308 = vperm.xlu1 %1330, %v290_v11   ;;  %v370_v12 = vsel %vm368_vm0, %v1227_v10, 0  ;;  %v376_v18 = vsel %vm368_vm0, %v1583_v16, 0  ;;  %s271_s30 = scalar_lea.vmem %s2331_s6, %s1308_s27 }
  0x17   : > { %381 = vmatpush1.bf16.msra.mxu1 %v1576_v8 }
  0x18   : > { %1230 = vmatprep.subr.msk.bf16.mxu1 %vm368_vm0, %v1228_v9 }
  0x1b   : > { %383 = vmatpush1.bf16.msra.mxu1 %v370_v12 }
  0x1c   : > { %1282 = vmatprep.subr.bf16.mxu1 %v1580_v13 }
  0x1e   : > { %1231 = vmatmul.mubr.msk.bf16.vlgmr.msra.gmra.mrb[0].mxu1 %vm361_vm1, %v1579_v14 }
  0x1f   : > { %1283 = vmatpush3.bf16.msra.mxu1 %v1580_v13  ;;  %420 = vmatprep.mubr.bf16.mxu1 %v2332_v0 }
  0x20   : > { %1284 = vmatprep.subr.bf16.mxu1 %v1582_v15 }
  0x23   : > { %1285 = vmatpush3.bf16.msra.mxu1 %v1582_v15 }
  0x24   : > { %1306 = vmatprep.subr.msk.bf16.mxu1 %vm368_vm0, %v1583_v16 }
  0x26   : > { %1232 = vmatmul.mubr.msk.bf16.gmra.mrb[4].mxu1 %vm361_vm1, %v1581_v17 }
  0x27   : > { %1287 = vmatpush3.bf16.msra.mxu1 %v376_v18  ;;  %1288 = vmatprep.mubr.msk.bf16.mxu1 %vm361_vm1, %v1579_v14 }
  0x2e   : > { %1289 = vmatmul.mubr.msk.bf16.vlgmr.msra.gmra.mrb[8].mxu1 %vm361_vm1, %v1581_v17 }
  0x90   : > { %v294_v21 = vpop.permute.xlu0 %293  ;;  %v304_v37 = vpop.permute.xlu1 %303 }
  0x94   : > { %v299_v28 = vpop.permute.xlu0 %298  ;;  %v309_v48 = vpop.permute.xlu1 %308 }
  0xf1   : > { %v412_v26 = vpop.f32.mrb[0].mxu1 }
  0xf2   : > { %v413_v29 = vadd.f32 %v412_v26, %v294_v21  ;;  %v414_v30 = vpop.f32.mrb[1].mxu1 }
  0xf3   : > { %v415_v31 = vadd.f32 %v414_v30, %v294_v21  ;;  %v416_v32 = vpop.f32.mrb[2].mxu1 }
  0xf4   : > { %v1738_v33 = vmul.f32 %v485_v25, %v413_v29  ;;  %v417_v34 = vadd.f32 %v416_v32, %v299_v28  ;;  %v418_v35 = vpop.f32.mrb[3].mxu1 }
  0xf5   : > { %v1740_v36 = vmul.f32 %v489_v27, %v415_v31  ;;  %v419_v38 = vadd.f32 %v418_v35, %v299_v28 }
  0xf6   : > { %v1235_v39 = vmul.f32 -1.442695, %v1738_v33  ;;  %v1743_v40 = vmul.f32 %v485_v25, %v417_v34 }
  0xf7   : > { %v1236_v41 = vmul.f32 -1.442695, %v1740_v36  ;;  %v1746_v42 = vmul.f32 %v489_v27, %v419_v38 }
  0xf8   : > { %1585 = vpow2.f32 %v1235_v39  ;;  %v1238_v43 = vmul.f32 -1.442695, %v1743_v40 }
  0xf9   : > { %1587 = vpow2.f32 %v1236_v41  ;;  %v1239_v44 = vmul.f32 -1.442695, %v1746_v42  ;;  %v422_v45 = vpop.f32.mrb[4].mxu1 }
  0xfa   : > { %1589 = vpow2.f32 %v1238_v43  ;;  %v423_v46 = vadd.f32 %v422_v45, %v304_v37  ;;  %v424_v47 = vpop.f32.mrb[5].mxu1 }
  0xfb   : > { %1591 = vpow2.f32 %v1239_v44  ;;  %v425_v49 = vadd.f32 %v424_v47, %v304_v37  ;;  %v426_v50 = vpop.f32.mrb[6].mxu1 }
  0xfc   : > { %v1750_v51 = vmul.f32 %v485_v25, %v423_v46  ;;  %v427_v52 = vadd.f32 %v426_v50, %v309_v48  ;;  %v428_v53 = vpop.f32.mrb[7].mxu1 }
  0xfd   : > { %v1753_v55 = vmul.f32 %v489_v27, %v425_v49  ;;  %v429_v56 = vadd.f32 %v428_v53, %v309_v48 }
  0xfe   : > { %v1241_v57 = vmul.f32 -1.442695, %v1750_v51  ;;  %v1756_v58 = vmul.f32 %v485_v25, %v427_v52 }
  0xff   : > { %v1242_v59 = vmul.f32 -1.442695, %v1753_v55  ;;  %v1759_v60 = vmul.f32 %v489_v27, %v429_v56 }
 0x100   : > { %1593 = vpow2.f32 %v1241_v57  ;;  %v1244_v61 = vmul.f32 -1.442695, %v1756_v58 }
 0x101   : > { %1595 = vpow2.f32 %v1242_v59  ;;  %v1245_v63 = vmul.f32 -1.442695, %v1759_v60  ;;  %v1290_v1 = vpop.f32.mrb[8].mxu1 }
 0x102   : > { %v1586_v2 = vpop.eup %1585  ;;  %1597 = vpow2.f32 %v1244_v61  ;;  %v474_v3 = vadd.f32 %v1290_v1, %v304_v37  ;;  %v465_v4 = vpop.f32.mrb[9].mxu1 }
 0x103   : > { %v1588_v5 = vpop.eup %1587  ;;  %v545_v6 = vadd.f32 1.0, %v1586_v2  ;;  %1599 = vpow2.f32 %v1245_v63  ;;  %v466_v7 = vadd.f32 %v465_v4, %v294_v21  ;;  %v1291_v8 = vpop.f32.mrb[10].mxu1 }
 0x104   : > { %v1590_v9 = vpop.eup %1589  ;;  %v546_v10 = vadd.f32 1.0, %v1588_v5  ;;  %v1763_v11 = vmul.f32 %v493_v62, %v474_v3  ;;  %v477_v12 = vadd.f32 %v1291_v8, %v309_v48  ;;  %v468_v13 = vpop.f32.mrb[11].mxu1 }
 0x105   : > { %v1592_v14 = vpop.eup %1591  ;;  %1601 = vrcp.f32 %v545_v6  ;;  %v548_v15 = vadd.f32 1.0, %v1590_v9  ;;  %v1765_v16 = vmul.f32 %v493_v62, %v466_v7  ;;  %v469_v17 = vadd.f32 %v468_v13, %v299_v28 }
 0x106   : > { %1603 = vrcp.f32 %v546_v10  ;;  %v549_v18 = vadd.f32 1.0, %v1592_v14  ;;  %v1243_v22 = vmul.f32 -1.442695, %v1763_v11  ;;  %v1768_v23 = vmul.f32 %v493_v62, %v477_v12 }
 0x107   : > { %1605 = vrcp.f32 %v548_v15  ;;  %v1237_v21 = vmul.f32 -1.442695, %v1765_v16  ;;  %v1771_v24 = vmul.f32 %v493_v62, %v469_v17 }
 0x108   : > { %1607 = vrcp.f32 %v549_v18  ;;  %v1246_v25 = vmul.f32 -1.442695, %v1768_v23 }
 0x109   : > { %1609 = vpow2.f32 %v1243_v22  ;;  %v1240_v26 = vmul.f32 -1.442695, %v1771_v24  ;;  %v945_v22 = vld [vmem:[%s2329_s4] sm:$0x3f] }
 0x10a   : > { %v1594_v27 = vpop.eup %1593  ;;  %1611 = vpow2.f32 %v1237_v21  ;;  %v953_v21 = vcombine.high %v945_v22, %v945_v22 }
 0x10b   : > { %v1596_v28 = vpop.eup %1595  ;;  %v551_v29 = vadd.f32 1.0, %v1594_v27  ;;  %1613 = vpow2.f32 %v1246_v25 }
 0x10c   : > { %v1598_v30 = vpop.eup %1597  ;;  %v552_v31 = vadd.f32 1.0, %v1596_v28  ;;  %1615 = vpow2.f32 %v1240_v26 }
 0x10d   : > { %v1600_v32 = vpop.eup %1599  ;;  %1617 = vrcp.f32 %v551_v29  ;;  %v554_v34 = vadd.f32 1.0, %v1598_v30 }
 0x10e   : > { %1619 = vrcp.f32 %v552_v31  ;;  %v555_v35 = vadd.f32 1.0, %v1600_v32 }
 0x10f   : > { %v1602_v37 = vpop.eup %1601  ;;  %1621 = vrcp.f32 %v554_v34 }
 0x110   : > { %v1604_v38 = vpop.eup %1603  ;;  %1623 = vrcp.f32 %v555_v35  ;;  %v581_v43 = vmul.f32 %v1602_v37, %v1738_v33 }
 0x111   : > { %v1606_v39 = vpop.eup %1605  ;;  %v582_v46 = vmul.f32 %v1604_v38, %v1740_v36 }
 0x112   : > { %v1608_v41 = vpop.eup %1607  ;;  %v584_v44 = vmul.f32 %v1606_v39, %v1743_v40 }
 0x113   : > { %v1610_v45 = vpop.eup %1609  ;;  %v585_v47 = vmul.f32 %v1608_v41, %v1746_v42 }
 0x114   : > { %v1612_v48 = vpop.eup %1611  ;;  %v553_v49 = vadd.f32 1.0, %v1610_v45  ;;  %v1779_v50 = vpack.i.bf16 %v584_v44, %v581_v43  ;;  %v593_v52 = vpack.c.bf16 %v584_v44, %v581_v43  ;;  %v1899_v43 = vand.u32 127, %v482_v19 }
 0x115   : > { %v1614_v53 = vpop.eup %1613  ;;  %v547_v54 = vadd.f32 1.0, %v1612_v48  ;;  %v594_v56 = vpack.c.bf16 %v585_v47, %v582_v46  ;;  %v1783_v33 = vpack.i.bf16 %v585_v47, %v582_v46 }
 0x116   : > { %v1616_v57 = vpop.eup %1615  ;;  %1625 = vrcp.f32 %v553_v49  ;;  %v556_v59 = vadd.f32 1.0, %v1614_v53  ;;  %1332 = vrot.lane.b32.xlu0 %v1779_v50, %s1642_s13  ;;  %vm625_vm2 = vcmp.lt.s32.totalorder %v1899_v43, 127  ;;  %vm668_vm3 = vcmp.lt.s32.totalorder %v1899_v43, 126 }
 0x117   : > { %v1618_v36 = vpop.eup %1617  ;;  %1627 = vrcp.f32 %v547_v54  ;;  %v550_v40 = vadd.f32 1.0, %v1616_v57  ;;  %975 = vmatprep.subr.bf16.mxu0 %v594_v56  ;;  %vm711_vm4 = vcmp.lt.s32.totalorder %v1899_v43, 111  ;;  %vm754_vm5 = vcmp.lt.s32.totalorder %v1899_v43, 110 }
 0x118   : > { %v1620_v42 = vpop.eup %1619  ;;  %1629 = vrcp.f32 %v556_v59  ;;  %976 = vmatpush1.bf16.msra.mxu0 %v593_v52  ;;  %v587_v62 = vmul.f32 %v1618_v36, %v1750_v51  ;;  %vm797_vm6 = vcmp.lt.s32.totalorder %v1899_v43, 109  ;;  %vm840_vm7 = vcmp.lt.s32.totalorder %v1899_v43, 94 }
 0x119   : > { %v1622_v61 = vpop.eup %1621  ;;  %1631 = vrcp.f32 %v550_v40  ;;  %v588_v2 = vmul.f32 %v1620_v42, %v1753_v55  ;;  %vm883_vm8 = vcmp.lt.s32.totalorder %v1899_v43, 93  ;;  %vm926_vm9 = vcmp.lt.s32.totalorder %v1899_v43, 92 }
 0x11a   : > { %v1624_v63 = vpop.eup %1623  ;;  %v590_v1 = vmul.f32 %v1622_v61, %v1756_v58  ;;  %1337 = vrot.lane.b32.xlu0 %v1779_v50, %s1643_s14 }
 0x11b   : > { %v591_v3 = vmul.f32 %v1624_v63, %v1759_v60 }
 0x11c   : > { %v1791_v4 = vpack.i.bf16 %v590_v1, %v587_v62  ;;  %v596_v5 = vpack.c.bf16 %v590_v1, %v587_v62 }
 0x11d   : > { %v597_v6 = vpack.c.bf16 %v591_v3, %v588_v2  ;;  %v1793_v7 = vpack.i.bf16 %v591_v3, %v588_v2 }
 0x11e   : > { %1372 = vrot.lane.b32.xlu1 %v1791_v4, %s1642_s13  ;;  %1342 = vrot.lane.b32.xlu0 %v1779_v50, %s1644_s15 }
 0x11f   : > { %977 = vmatprep.subr.bf16.mxu0 %v597_v6 }
 0x120   : > { %v1626_v51 = vpop.eup %1625  ;;  %978 = vmatpush1.bf16.msra.mxu0 %v596_v5 }
 0x121   : > { %v1628_v58 = vpop.eup %1627  ;;  %v1804_v8 = vmul.f32 %v1626_v51, %v1763_v11 }
 0x122   : > { %v1630_v55 = vpop.eup %1629  ;;  %1377 = vrot.lane.b32.xlu1 %v1791_v4, %s1643_s14  ;;  %1347 = vrot.lane.b32.xlu0 %v1779_v50, %s1645_s16  ;;  %v1810_v10 = vmul.f32 %v1628_v58, %v1765_v16  ;;  %v1649_v16 = vmov 1983009808  }
 0x123   : > { %v1632_v60 = vpop.eup %1631  ;;  %v1807_v9 = vmul.f32 %v1630_v55, %v1768_v23  ;;  %v955_v17 = vunpack.c.l.s4 %v1649_v16 }
 0x124   : > { %v1813_v12 = vmul.f32 %v1632_v60, %v1771_v24 }
 0x125   : > { %v1401_v13 = vpack.i.bf16 %v1807_v9, %v1804_v8  ;;  %v598_v15 = vpack.c.bf16 %v1807_v9, %v1804_v8  ;;  %v956_v18 = vunpack.c.0.s8 %v955_v17 }
 0x126   : > { %1382 = vrot.lane.b32.xlu1 %v1791_v4, %s1644_s15  ;;  %1352 = vrot.lane.b32.xlu0 %v1783_v33, %s1642_s13  ;;  %v1416_v11 = vpack.i.bf16 %v1813_v12, %v1810_v10  ;;  %v595_v14 = vpack.c.bf16 %v1813_v12, %v1810_v10 }
 0x127   : > { %v959_v23 = vsub.s32 %v956_v18, %v1731_v20  ;;  %v946_v20 = vld [vmem:[%s2330_s5] sm:$0xf] }
 0x129   : > { %v1867_v24 = vrot.slane %v945_v22, %v959_v23  ;;  %v1869_v25 = vrot.slane %v953_v21, %v959_v23 }
 0x12a   : > { %1387 = vrot.lane.b32.xlu1 %v1793_v7, %s1642_s13  ;;  %1357 = vrot.lane.b32.xlu0 %v1783_v33, %s1643_s14 }
 0x12b   : > { %v968_v26 = vcombine.high %v1867_v24, %v1867_v24 }
 0x12d   : > { %1007 = vmatprep.mubr.bf16.mxu0 %v968_v26  ;;  %1089 = vmatprep.mubr.bf16.mxu1 %v968_v26 }
 0x12e   : > { %1392 = vrot.lane.b32.xlu1 %v1793_v7, %s1643_s14  ;;  %1362 = vrot.lane.b32.xlu0 %v1783_v33, %s1644_s15 }
 0x132   : > { %1397 = vrot.lane.b32.xlu1 %v1793_v7, %s1644_s15  ;;  %1367 = vrot.lane.b32.xlu0 %v1783_v33, %s1645_s16 }
 0x136   : > { %1417 = vrot.lane.b32.xlu1 %v1416_v11, %s1642_s13  ;;  %1402 = vrot.lane.b32.xlu0 %v1401_v13, %s1642_s13 }
 0x13a   : > { %1422 = vrot.lane.b32.xlu1 %v1793_v7, %s1645_s16  ;;  %1407 = vrot.lane.b32.xlu0 %v1401_v13, %s1643_s14 }
 0x13e   : > { %1432 = vrot.lane.b32.xlu1 %v1416_v11, %s1643_s14  ;;  %1412 = vrot.lane.b32.xlu0 %v1401_v13, %s1644_s15 }
 0x142   : > { %1437 = vrot.lane.b32.xlu1 %v1791_v4, %s1645_s16  ;;  %1427 = vrot.lane.b32.xlu0 %v1401_v13, %s1645_s16 }
 0x146   : > { %1452 = vrot.lane.b32.xlu1 %v1416_v11, %s1644_s15  ;;  %1442 = vrot.lane.b32.xlu0 %v1783_v33, %s1646_s17 }
 0x14a   : > { %1457 = vrot.lane.b32.xlu1 %v1793_v7, %s1646_s17  ;;  %1447 = vrot.lane.b32.xlu0 %v1779_v50, %s1646_s17 }
 0x14e   : > { %1467 = vrot.lane.b32.xlu1 %v1416_v11, %s1645_s16  ;;  %1462 = vrot.lane.b32.xlu0 %v1401_v13, %s1646_s17 }
 0x152   : > { %1472 = vrot.lane.b32.xlu1 %v1791_v4, %s1646_s17  ;;  %1477 = vrot.lane.b32.xlu0 %v1783_v33, %s1647_s18 }
 0x156   : > { %1487 = vrot.lane.b32.xlu1 %v1416_v11, %s1646_s17  ;;  %1482 = vrot.lane.b32.xlu0 %v1779_v50, %s1647_s18 }
 0x15a   : > { %1492 = vrot.lane.b32.xlu1 %v1793_v7, %s1647_s18  ;;  %1497 = vrot.lane.b32.xlu0 %v1401_v13, %s1647_s18 }
 0x15e   : > { %1502 = vrot.lane.b32.xlu1 %v1416_v11, %s1647_s18  ;;  %1512 = vrot.lane.b32.xlu0 %v1783_v33, %s1648_s19 }
 0x162   : > { %1507 = vrot.lane.b32.xlu1 %v1791_v4, %s1647_s18  ;;  %1517 = vrot.lane.b32.xlu0 %v1779_v50, %s1648_s19 }
 0x166   : > { %1522 = vrot.lane.b32.xlu1 %v1416_v11, %s1648_s19  ;;  %1532 = vrot.lane.b32.xlu0 %v1401_v13, %s1648_s19 }
 0x16a   : > { %1527 = vrot.lane.b32.xlu1 %v1793_v7, %s1648_s19  ;;  %1542 = vrot.lane.b32.xlu0 %v1783_v33, %s1650_s24 }
 0x16e   : > { %1537 = vrot.lane.b32.xlu1 %v1791_v4, %s1648_s19  ;;  %1547 = vrot.lane.b32.xlu0 %v1779_v50, %s1650_s24 }
 0x172   : > { %1552 = vrot.lane.b32.xlu1 %v1416_v11, %s1650_s24  ;;  %1562 = vrot.lane.b32.xlu0 %v1401_v13, %s1650_s24 }
 0x176   : > { %1557 = vrot.lane.b32.xlu1 %v1793_v7, %s1650_s24  ;;  %949 = vperm.xlu0 %1329, %v946_v20  }
 0x17a   : > { %1567 = vrot.lane.b32.xlu1 %v1791_v4, %s1650_s24 }
 0x188   : > { %v1880_v27 = vpop.permute.xlu0 %1332 }
 0x189   : > { %v1335_v50 = vunpack.i.h.bf16 %v1880_v27  ;;  %v1334_v52 = vunpack.i.l.bf16 %v1880_v27 }
 0x18c   : > { %v1882_v28 = vpop.permute.xlu0 %1337 }
 0x18d   : > { %v2334_v6 = vunpack.i.h.bf16 %v1882_v28  ;;  %v1339_v58 = vunpack.i.l.bf16 %v1882_v28 }
 0x190   : > { %v1884_v29 = vpop.permute.xlu1 %1372  ;;  %v1886_v30 = vpop.permute.xlu0 %1342 }
 0x191   : > { %v1375_v63 = vunpack.i.h.bf16 %v1884_v29  ;;  %v1374_v1 = vunpack.i.l.bf16 %v1884_v29 }
 0x194   : > { %v1888_v31 = vpop.permute.xlu1 %1377  ;;  %v1890_v32 = vpop.permute.xlu0 %1347 }
 0x195   : > { %v1349_v0 = vunpack.i.l.bf16 %v1890_v32 }
 0x198   : > { %v1892_v34 = vpop.permute.xlu1 %1382  ;;  %v1353_v35 = vpop.permute.xlu0 %1352 }
 0x199   : > { %v1355_v46 = vunpack.i.h.bf16 %v1353_v35  ;;  %v1354_v47 = vunpack.i.l.bf16 %v1353_v35 }
 0x19b   : > { %v630_v57 = vsel %vm625_vm2, %v1334_v52, %v1354_v47  ;;  %v631_v59 = vsel %vm625_vm2, %v1335_v50, %v1355_v46 }
 0x19c   : > { %v1388_v37 = vpop.permute.xlu1 %1387  ;;  %v1358_v38 = vpop.permute.xlu0 %1357  ;;  %v638_v51 = vpack.c.bf16 %v631_v59, %v630_v57  ;;  %v1380_v59 = vunpack.i.h.bf16 %v1888_v31 }
 0x19d   : > { %v1390_v33 = vunpack.i.h.bf16 %v1388_v37  ;;  %v1389_v36 = vunpack.i.l.bf16 %v1388_v37  ;;  %v1359_v2 = vunpack.i.l.bf16 %v1358_v38  ;;  %v1360_v7 = vunpack.i.h.bf16 %v1358_v38 }
 0x19e   : > { %v2338_v38 = vunpack.i.h.bf16 %v1886_v30 }
 0x19f   : > { %v632_v11 = vsel %vm625_vm2, %v1374_v1, %v1389_v36  ;;  %v633_v16 = vsel %vm625_vm2, %v1375_v63, %v1390_v33  ;;  %v673_v21 = vsel %vm668_vm3, %v1339_v58, %v1359_v2  ;;  %v674_v37 = vsel %vm668_vm3, %v2334_v6, %v1360_v7 }
 0x1a0   : > { %v1894_v39 = vpop.permute.xlu1 %1392  ;;  %v1896_v41 = vpop.permute.xlu0 %1362  ;;  %v641_v35 = vpack.c.bf16 %v633_v16, %v632_v11 }
 0x1a1   : > { %v1395_v26 = vunpack.i.h.bf16 %v1894_v39  ;;  %v1394_v20 = vunpack.i.l.bf16 %v1894_v39 }
 0x1a4   : > { %v1901_v44 = vpop.permute.xlu1 %1397  ;;  %v1903_v45 = vpop.permute.xlu0 %1367 }
 0x1a5   : > { %v1399_v11 = vunpack.i.l.bf16 %v1901_v44  ;;  %v1370_v16 = vunpack.i.h.bf16 %v1903_v45 }
 0x1a8   : > { %v1906_v48 = vpop.permute.xlu1 %1417  ;;  %v1908_v49 = vpop.permute.xlu0 %1402 }
 0x1a9   : > { %v1420_v53 = vunpack.i.h.bf16 %v1906_v48  ;;  %v1419_v19 = vunpack.i.l.bf16 %v1906_v48  ;;  %v1405_v54 = vunpack.i.h.bf16 %v1908_v49  ;;  %v1404_v56 = vunpack.i.l.bf16 %v1908_v49 }
 0x1ab   : > { %v626_v61 = vsel %vm625_vm2, %v1354_v47, %v1419_v19  ;;  %v627_v62 = vsel %vm625_vm2, %v1355_v46, %v1420_v53  ;;  %v628_v4 = vsel %vm625_vm2, %v1389_v36, %v1404_v56  ;;  %v629_v5 = vsel %vm625_vm2, %v1390_v33, %v1405_v54 }
 0x1ac   : > { %v1924_v40 = vpop.permute.xlu1 %1422  ;;  %v1926_v42 = vpop.permute.xlu0 %1407  ;;  %v639_v3 = vpack.c.bf16 %v627_v62, %v626_v61  ;;  %v642_v13 = vpack.c.bf16 %v629_v5, %v628_v4  ;;  %v1379_v33 = vunpack.i.l.bf16 %v1888_v31  ;;  %v2342_v62 = vunpack.i.l.bf16 %v1886_v30 }
 0x1ad   : > { %v1410_v17 = vunpack.i.h.bf16 %v1926_v42  ;;  %v1409_v18 = vunpack.i.l.bf16 %v1926_v42  ;;  %v681_v4 = vpack.c.bf16 %v674_v37, %v673_v21  ;;  %v1364_v5 = vunpack.i.l.bf16 %v1896_v41 }
 0x1ae   : > { %979 = vmatprep.subr.bf16.mxu0 %v639_v3  ;;  %v1369_v21 = vunpack.i.l.bf16 %v1903_v45  ;;  %v2337_v45 = vunpack.i.h.bf16 %v1892_v34  ;;  %v1424_v27 = vunpack.i.l.bf16 %v1924_v40 }
 0x1af   : > { %980 = vmatpush1.bf16.msra.mxu0 %v638_v51  ;;  %v671_v36 = vsel %vm668_vm3, %v1394_v20, %v1409_v18  ;;  %v672_v61 = vsel %vm668_vm3, %v1395_v26, %v1410_v17  ;;  %v675_v51 = vsel %vm668_vm3, %v1379_v33, %v1394_v20 }
 0x1b0   : > { %v1949_v55 = vpop.permute.xlu1 %1432  ;;  %v1951_v60 = vpop.permute.xlu0 %1412  ;;  %981 = vmatprep.subr.bf16.mxu0 %v642_v13  ;;  %v676_v13 = vsel %vm668_vm3, %v1380_v59, %v1395_v26  ;;  %v685_v37 = vpack.c.bf16 %v672_v61, %v671_v36 }
 0x1b1   : > { %v2333_v22 = vunpack.i.h.bf16 %v1949_v55  ;;  %v1434_v23 = vunpack.i.l.bf16 %v1949_v55  ;;  %v2339_v20 = vunpack.i.l.bf16 %v1951_v60 }
 0x1b3   : > { %v669_v57 = vsel %vm668_vm3, %v1359_v2, %v1434_v23  ;;  %v670_v39 = vsel %vm668_vm3, %v1360_v7, %v2333_v22  ;;  %982 = vmatpush1.bf16.msra.mxu0 %v641_v35  ;;  %v1365_v2 = vunpack.i.h.bf16 %v1896_v41  ;;  %v1400_v7 = vunpack.i.h.bf16 %v1901_v44 }
 0x1b4   : > { %v1977_v46 = vpop.permute.xlu1 %1437  ;;  %v1979_v47 = vpop.permute.xlu0 %1427  ;;  %v682_v3 = vpack.c.bf16 %v670_v39, %v669_v57  ;;  %v2340_v57 = vunpack.i.h.bf16 %v1951_v60  ;;  %v1350_v44 = vunpack.i.h.bf16 %v1890_v32  ;;  %v684_v22 = vpack.c.bf16 %v676_v13, %v675_v51 }
 0x1b5   : > { %v716_v32 = vsel %vm711_vm4, %v2342_v62, %v1364_v5  ;;  %v717_v13 = vsel %vm711_vm4, %v2338_v38, %v1365_v2  ;;  %v1429_v38 = vunpack.i.l.bf16 %v1979_v47 }
 0x1b6   : > { %983 = vmatprep.subr.bf16.mxu0 %v682_v3  ;;  %v2335_v3 = vunpack.i.l.bf16 %v1892_v34 }
 0x1b7   : > { %984 = vmatpush1.bf16.msra.mxu0 %v681_v4 }
 0x1b8   : > { %v2015_v41 = vpop.permute.xlu1 %1452  ;;  %v2017_v35 = vpop.permute.xlu0 %1442  ;;  %985 = vmatprep.subr.bf16.mxu0 %v685_v37  ;;  %v718_v37 = vsel %vm711_vm4, %v2335_v3, %v1399_v11  ;;  %v760_v3 = vsel %vm754_vm5, %v1350_v44, %v1370_v16 }
 0x1b9   : > { %v2336_v39 = vunpack.i.h.bf16 %v2015_v41  ;;  %v2341_v26 = vunpack.i.l.bf16 %v2015_v41 }
 0x1bb   : > { %v712_v36 = vsel %vm711_vm4, %v1364_v5, %v2341_v26  ;;  %v713_v61 = vsel %vm711_vm4, %v1365_v2, %v2336_v39  ;;  %v719_v5 = vsel %vm711_vm4, %v2337_v45, %v1400_v7  ;;  %986 = vmatpush1.bf16.msra.mxu0 %v684_v22  ;;  %v715_v2 = vsel %vm711_vm4, %v1400_v7, %v2340_v57 }
 0x1bc   : > { %v2039_v4 = vpop.permute.xlu1 %1457  ;;  %v2041_v6 = vpop.permute.xlu0 %1447  ;;  %v725_v51 = vpack.c.bf16 %v713_v61, %v712_v36  ;;  %v714_v36 = vsel %vm711_vm4, %v1399_v11, %v2339_v20  ;;  %v759_v61 = vsel %vm754_vm5, %v1349_v0, %v1369_v21  ;;  %v1440_v39 = vunpack.i.h.bf16 %v1977_v46 }
 0x1bd   : > { %v1439_v22 = vunpack.i.l.bf16 %v1977_v46  ;;  %v1430_v45 = vunpack.i.h.bf16 %v1979_v47  ;;  %v724_v11 = vpack.c.bf16 %v717_v13, %v716_v32  ;;  %v2078_v7 = vsel %vm625_vm2, %v1419_v19, %v1334_v52 }
 0x1be   : > { %987 = vmatprep.subr.bf16.mxu0 %v725_v51  ;;  %v728_v46 = vpack.c.bf16 %v715_v2, %v714_v36  ;;  %v727_v26 = vpack.c.bf16 %v719_v5, %v718_v37  ;;  %v767_v62 = vpack.c.bf16 %v760_v3, %v759_v61  ;;  %v2088_v47 = vsel %vm625_vm2, %v1420_v53, %v1335_v50 }
 0x1bf   : > { %v2096_v52 = vsel %vm625_vm2, %v1405_v54, %v1375_v63  ;;  %988 = vmatpush1.bf16.msra.mxu0 %v724_v11  ;;  %v1425_v3 = vunpack.i.h.bf16 %v1924_v40  ;;  %v765_v48 = vsel %vm754_vm5, %v1429_v38, %v1439_v22  ;;  %v766_v50 = vsel %vm754_vm5, %v1430_v45, %v1440_v39 }
 0x1c0   : > { %v1468_v20 = vpop.permute.xlu1 %1467  ;;  %v2080_v57 = vpop.permute.xlu0 %1462  ;;  %989 = vmatprep.subr.bf16.mxu0 %v728_v46  ;;  %v757_v5 = vsel %vm754_vm5, %v1424_v27, %v1429_v38  ;;  %v1449_v36 = vunpack.i.l.bf16 %v2041_v6  ;;  %v1450_v2 = vunpack.i.h.bf16 %v2041_v6  ;;  %v640_v38 = vpack.c.bf16 %v2088_v47, %v2078_v7 }
 0x1c1   : > { %v1470_v19 = vunpack.i.h.bf16 %v1468_v20  ;;  %v1469_v32 = vunpack.i.l.bf16 %v1468_v20  ;;  %v1464_v61 = vunpack.i.l.bf16 %v2080_v57  ;;  %v1465_v29 = vunpack.i.h.bf16 %v2080_v57 }
 0x1c3   : > { %v755_v53 = vsel %vm754_vm5, %v1369_v21, %v1469_v32  ;;  %v756_v54 = vsel %vm754_vm5, %v1370_v16, %v1470_v19  ;;  %v763_v63 = vsel %vm754_vm5, %v1469_v32, %v1349_v0  ;;  %v764_v20 = vsel %vm754_vm5, %v1470_v19, %v1350_v44  ;;  %990 = vmatpush1.bf16.msra.mxu0 %v727_v26 }
 0x1c4   : > { %v1473_v40 = vpop.permute.xlu1 %1472  ;;  %v2112_v51 = vpop.permute.xlu0 %1477  ;;  %v768_v13 = vpack.c.bf16 %v756_v54, %v755_v53  ;;  %v769_v37 = vpack.c.bf16 %v764_v20, %v763_v63  ;;  %v758_v21 = vsel %vm754_vm5, %v1425_v3, %v1430_v45  ;;  %v772_v16 = vpack.c.bf16 %v766_v50, %v765_v48 }
 0x1c5   : > { %v761_v0 = vsel %vm754_vm5, %v1439_v22, %v1424_v27  ;;  %v762_v44 = vsel %vm754_vm5, %v1440_v39, %v1425_v3  ;;  %v1475_v11 = vunpack.i.h.bf16 %v1473_v40  ;;  %v1474_v46 = vunpack.i.l.bf16 %v1473_v40 }
 0x1c6   : > { %991 = vmatprep.subr.bf16.mxu0 %v768_v13  ;;  %1257 = vmatprep.subr.bf16.mxu1 %v769_v37  ;;  %v2133_v26 = vsel %vm625_vm2, %v1404_v56, %v1374_v1  ;;  %v1444_v39 = vunpack.i.l.bf16 %v2017_v35  ;;  %v771_v6 = vpack.c.bf16 %v758_v21, %v757_v5  ;;  %v1445_v45 = vunpack.i.h.bf16 %v2017_v35 }
 0x1c7   : > { %1258 = vmatpush3.bf16.msra.mxu1 %v595_v14  ;;  %v1459_v22 = vunpack.i.l.bf16 %v2039_v4  ;;  %v770_v56 = vpack.c.bf16 %v762_v44, %v761_v0  ;;  %v1460_v1 = vunpack.i.h.bf16 %v2039_v4  ;;  %992 = vmatpush1.bf16.msra.mxu0 %v767_v62  ;;  %v808_v57 = vsel %vm797_vm6, %v1464_v61, %v1474_v46 }
 0x1c8   : > { %v1488_v49 = vpop.permute.xlu1 %1487  ;;  %v2143_v7 = vpop.permute.xlu0 %1482  ;;  %1259 = vmatprep.subr.bf16.mxu1 %v772_v16  ;;  %v802_v12 = vsel %vm797_vm6, %v1449_v36, %v1444_v39  ;;  %993 = vmatprep.subr.bf16.mxu0 %v771_v6  ;;  %v803_v14 = vsel %vm797_vm6, %v1450_v2, %v1445_v45  ;;  %v809_v19 = vsel %vm797_vm6, %v1465_v29, %v1475_v11  ;;  %v1480_v44 = vunpack.i.h.bf16 %v2112_v51 }
 0x1c9   : > { %v1490_v47 = vunpack.i.h.bf16 %v1488_v49  ;;  %v1489_v10 = vunpack.i.l.bf16 %v1488_v49  ;;  %v800_v35 = vsel %vm797_vm6, %v1459_v22, %v1464_v61  ;;  %v801_v8 = vsel %vm797_vm6, %v1460_v1, %v1465_v29 }
 0x1ca   : > { %v804_v9 = vsel %vm797_vm6, %v1474_v46, %v1459_v22  ;;  %v1484_v54 = vunpack.i.l.bf16 %v2143_v7  ;;  %v815_v63 = vpack.c.bf16 %v809_v19, %v808_v57  ;;  %v805_v20 = vsel %vm797_vm6, %v1475_v11, %v1460_v1 }
 0x1cb   : > { %1260 = vmatpush3.bf16.msra.mxu1 %v598_v15  ;;  %v798_v62 = vsel %vm797_vm6, %v1444_v39, %v1489_v10  ;;  %v799_v4 = vsel %vm797_vm6, %v1445_v45, %v1490_v47  ;;  %v806_v32 = vsel %vm797_vm6, %v1489_v10, %v1449_v36  ;;  %v807_v3 = vsel %vm797_vm6, %v1490_v47, %v1450_v2 }
 0x1cc   : > { %v2167_v27 = vpop.permute.xlu1 %1492  ;;  %v2169_v48 = vpop.permute.xlu0 %1497  ;;  %v811_v50 = vpack.c.bf16 %v799_v4, %v798_v62  ;;  %v812_v53 = vpack.c.bf16 %v807_v3, %v806_v32  ;;  %v1485_v15 = vunpack.i.h.bf16 %v2143_v7  ;;  %994 = vmatpush1.bf16.msra.mxu0 %v770_v56  ;;  %v643_v21 = vpack.c.bf16 %v2096_v52, %v2133_v26 }
 0x1cd   : > { %v1495_v40 = vunpack.i.h.bf16 %v2167_v27  ;;  %v1494_v13 = vunpack.i.l.bf16 %v2167_v27  ;;  %v1500_v37 = vunpack.i.h.bf16 %v2169_v48  ;;  %v1499_v5 = vunpack.i.l.bf16 %v2169_v48 }
 0x1ce   : > { %995 = vmatprep.subr.bf16.mxu0 %v811_v50  ;;  %1261 = vmatprep.subr.bf16.mxu1 %v812_v53  ;;  %v680_v36 = vsel %vm668_vm3, %v1410_v17, %v1380_v59  ;;  %v679_v16 = vsel %vm668_vm3, %v1409_v18, %v1379_v33  ;;  %v810_v0 = vpack.c.bf16 %v803_v14, %v802_v12  ;;  %v1479_v17 = vunpack.i.l.bf16 %v2112_v51 }
 0x1cf   : > { %1262 = vmatpush3.bf16.msra.mxu1 %v640_v38  ;;  %v677_v52 = vsel %vm668_vm3, %v1434_v23, %v1339_v58  ;;  %v814_v42 = vpack.c.bf16 %v801_v8, %v800_v35  ;;  %v2343_v18 = vunpack.i.h.bf16 %v1882_v28  ;;  %v2344_v33 = vunpack.i.h.bf16 %v1949_v55 }
 0x1d0   : > { %v1503_v59 = vpop.permute.xlu1 %1502  ;;  %v2205_v31 = vpop.permute.xlu0 %1512  ;;  %1263 = vmatprep.subr.bf16.mxu1 %v815_v63  ;;  %996 = vmatpush1.bf16.msra.mxu0 %v810_v0  ;;  %v813_v58 = vpack.c.bf16 %v805_v20, %v804_v9  ;;  %v845_v23 = vsel %vm840_vm7, %v1484_v54, %v1479_v17  ;;  %v846_v51 = vsel %vm840_vm7, %v1485_v15, %v1480_v44  ;;  %v2345_v56 = vunpack.i.l.bf16 %v1886_v30 }
 0x1d1   : > { %v678_v2 = vsel %vm668_vm3, %v2344_v33, %v2343_v18  ;;  %v1505_v61 = vunpack.i.h.bf16 %v1503_v59  ;;  %v1504_v11 = vunpack.i.l.bf16 %v1503_v59  ;;  %997 = vmatprep.subr.bf16.mxu0 %v814_v42  ;;  %v843_v46 = vsel %vm840_vm7, %v1494_v13, %v1499_v5 }
 0x1d2   : > { %v844_v28 = vsel %vm840_vm7, %v1495_v40, %v1500_v37  ;;  %v686_v6 = vpack.c.bf16 %v680_v36, %v679_v16  ;;  %v683_v7 = vpack.c.bf16 %v678_v2, %v677_v52  ;;  %v2346_v1 = vunpack.i.l.bf16 %v2015_v41 }
 0x1d3   : > { %1264 = vmatpush3.bf16.msra.mxu1 %v643_v21  ;;  %v841_v55 = vsel %vm840_vm7, %v1479_v17, %v1504_v11  ;;  %v842_v38 = vsel %vm840_vm7, %v1480_v44, %v1505_v61  ;;  %v849_v26 = vsel %vm840_vm7, %v1504_v11, %v1484_v54  ;;  %v850_v39 = vsel %vm840_vm7, %v1505_v61, %v1485_v15 }
 0x1d4   : > { %v1508_v45 = vpop.permute.xlu1 %1507  ;;  %v1518_v22 = vpop.permute.xlu0 %1517  ;;  %v854_v29 = vpack.c.bf16 %v842_v38, %v841_v55  ;;  %v855_v49 = vpack.c.bf16 %v850_v39, %v849_v26  ;;  %v720_v47 = vsel %vm711_vm4, %v2346_v1, %v2345_v56  ;;  %998 = vmatpush1.bf16.msra.mxu0 %v813_v58  ;;  %v2347_v14 = vunpack.i.h.bf16 %v1886_v30 }
 0x1d5   : > { %v1510_v10 = vunpack.i.h.bf16 %v1508_v45  ;;  %v1509_v12 = vunpack.i.l.bf16 %v1508_v45  ;;  %v2348_v35 = vunpack.i.h.bf16 %v2015_v41  ;;  %v853_v19 = vpack.c.bf16 %v846_v51, %v845_v23 }
 0x1d6   : > { %999 = vmatprep.subr.bf16.mxu0 %v854_v29  ;;  %1265 = vmatprep.subr.bf16.mxu1 %v855_v49  ;;  %v857_v62 = vpack.c.bf16 %v844_v28, %v843_v46  ;;  %v1515_v3 = vunpack.i.h.bf16 %v2205_v31  ;;  %v1520_v27 = vunpack.i.h.bf16 %v1518_v22  ;;  %v1519_v48 = vunpack.i.l.bf16 %v1518_v22 }
 0x1d7   : > { %v721_v57 = vsel %vm711_vm4, %v2348_v35, %v2347_v14  ;;  %1266 = vmatpush3.bf16.msra.mxu1 %v683_v7  ;;  %v851_v4 = vsel %vm840_vm7, %v1499_v5, %v1509_v12  ;;  %v852_v32 = vsel %vm840_vm7, %v1500_v37, %v1510_v10  ;;  %v847_v30 = vsel %vm840_vm7, %v1509_v12, %v1494_v13 }
 0x1d8   : > { %v848_v41 = vsel %vm840_vm7, %v1510_v10, %v1495_v40  ;;  %v1523_v50 = vpop.permute.xlu1 %1522  ;;  %v1533_v53 = vpop.permute.xlu0 %1532  ;;  %v858_v8 = vpack.c.bf16 %v852_v32, %v851_v4  ;;  %v1514_v9 = vunpack.i.l.bf16 %v2205_v31  ;;  %1000 = vmatpush1.bf16.msra.mxu0 %v853_v19  ;;  %v726_v20 = vpack.c.bf16 %v721_v57, %v720_v47 }
 0x1d9   : > { %v1525_v15 = vunpack.i.h.bf16 %v1523_v50  ;;  %v1524_v54 = vunpack.i.l.bf16 %v1523_v50  ;;  %v856_v63 = vpack.c.bf16 %v848_v41, %v847_v30  ;;  %1001 = vmatprep.subr.bf16.mxu0 %v857_v62  ;;  %v889_v44 = vsel %vm883_vm8, %v1520_v27, %v1515_v3 }
 0x1da   : > { %1267 = vmatprep.subr.bf16.mxu1 %v858_v8  ;;  %v888_v52 = vsel %vm883_vm8, %v1519_v48, %v1514_v9  ;;  %v1535_v17 = vunpack.i.h.bf16 %v1533_v53  ;;  %v1534_v59 = vunpack.i.l.bf16 %v1533_v53  ;;  %v2349_v55 = vunpack.i.h.bf16 %v1892_v34 }
 0x1db   : > { %1268 = vmatpush3.bf16.msra.mxu1 %v686_v6  ;;  %v884_v40 = vsel %vm883_vm8, %v1514_v9, %v1524_v54  ;;  %v885_v13 = vsel %vm883_vm8, %v1515_v3, %v1525_v15  ;;  %v892_v37 = vsel %vm883_vm8, %v1524_v54, %v1519_v48  ;;  %v893_v5 = vsel %vm883_vm8, %v1525_v15, %v1520_v27 }
 0x1dc   : > { %v1528_v21 = vpop.permute.xlu1 %1527  ;;  %v1543_v36 = vpop.permute.xlu0 %1542  ;;  %v897_v16 = vpack.c.bf16 %v885_v13, %v884_v40  ;;  %v898_v0 = vpack.c.bf16 %v893_v5, %v892_v37  ;;  %1002 = vmatpush1.bf16.msra.mxu0 %v856_v63  ;;  %v896_v18 = vpack.c.bf16 %v889_v44, %v888_v52  ;;  %v2350_v38 = vunpack.i.h.bf16 %v1951_v60 }
 0x1dd   : > { %v1530_v31 = vunpack.i.h.bf16 %v1528_v21  ;;  %v1529_v42 = vunpack.i.l.bf16 %v1528_v21  ;;  %v2351_v39 = vunpack.i.l.bf16 %v1892_v34  ;;  %v2352_v6 = vunpack.i.l.bf16 %v1951_v60 }
 0x1de   : > { %1003 = vmatprep.subr.bf16.mxu0 %v897_v16  ;;  %1269 = vmatprep.subr.bf16.mxu1 %v898_v0  ;;  %v723_v26 = vsel %vm711_vm4, %v2350_v38, %v2349_v55  ;;  %v1545_v22 = vunpack.i.h.bf16 %v1543_v36  ;;  %v1544_v29 = vunpack.i.l.bf16 %v1543_v36  ;;  %v1651_v15 = vmov 0.0  }
 0x1df   : > { %1270 = vmatpush3.bf16.msra.mxu1 %v726_v20  ;;  %v886_v33 = vsel %vm883_vm8, %v1529_v42, %v1534_v59  ;;  %v887_v2 = vsel %vm883_vm8, %v1530_v31, %v1535_v17  ;;  %v722_v45 = vsel %vm711_vm4, %v2352_v6, %v2351_v39  ;;  %v2353_v20 = vmov 0  }
 0x1e0   : > { %v1538_v61 = vpop.permute.xlu1 %1537  ;;  %v1548_v11 = vpop.permute.xlu0 %1547  ;;  %v900_v58 = vpack.c.bf16 %v887_v2, %v886_v33  ;;  %1004 = vmatpush1.bf16.msra.mxu0 %v896_v18  ;;  %v729_v57 = vpack.c.bf16 %v723_v26, %v722_v45 }
 0x1e1   : > { %v1540_v23 = vunpack.i.h.bf16 %v1538_v61  ;;  %v1539_v51 = vunpack.i.l.bf16 %v1538_v61  ;;  %v1550_v46 = vunpack.i.h.bf16 %v1548_v11  ;;  %v1549_v28 = vunpack.i.l.bf16 %v1548_v11 }
 0x1e2   : > { %1005 = vmatprep.subr.bf16.mxu0 %v900_v58 }
 0x1e3   : > { %v890_v49 = vsel %vm883_vm8, %v1539_v51, %v1529_v42  ;;  %v891_v7 = vsel %vm883_vm8, %v1540_v23, %v1530_v31  ;;  %v894_v34 = vsel %vm883_vm8, %v1534_v59, %v1539_v51  ;;  %v895_v60 = vsel %vm883_vm8, %v1535_v17, %v1540_v23 }
 0x1e4   : > { %v1553_v56 = vpop.permute.xlu1 %1552  ;;  %v899_v1 = vpack.c.bf16 %v891_v7, %v890_v49  ;;  %v931_v47 = vsel %vm926_vm9, %v1549_v28, %v1544_v29  ;;  %v932_v10 = vsel %vm926_vm9, %v1550_v46, %v1545_v22  ;;  %v1563_v35 = vpop.permute.xlu0 %1562  ;;  %v901_v19 = vpack.c.bf16 %v895_v60, %v894_v34 }
 0x1e5   : > { %v1555_v12 = vunpack.i.h.bf16 %v1553_v56  ;;  %v1554_v14 = vunpack.i.l.bf16 %v1553_v56  ;;  %v939_v41 = vpack.c.bf16 %v932_v10, %v931_v47  ;;  %v1565_v3 = vunpack.i.h.bf16 %v1563_v35 }
 0x1e6   : > { %1006 = vmatpush1.bf16.msra.mxu0 %v899_v1  ;;  %1271 = vmatprep.subr.bf16.mxu1 %v901_v19  ;;  %v1564_v53 = vunpack.i.l.bf16 %v1563_v35 }
 0x1e7   : > { %v935_v62 = vsel %vm926_vm9, %v1554_v14, %v1549_v28  ;;  %v936_v4 = vsel %vm926_vm9, %v1555_v12, %v1550_v46  ;;  %v927_v32 = vsel %vm926_vm9, %v1544_v29, %v1554_v14  ;;  %v928_v30 = vsel %vm926_vm9, %v1545_v22, %v1555_v12  ;;  %1272 = vmatpush3.bf16.msra.mxu1 %v729_v57 }
 0x1e8   : > { %v1558_v27 = vpop.permute.xlu1 %1557  ;;  %v940_v48 = vpack.c.bf16 %v928_v30, %v927_v32  ;;  %v941_v50 = vpack.c.bf16 %v936_v4, %v935_v62  ;;  %1292 = vmatprep.subr.bf16.mxu1 %v1651_v15 }
 0x1e9   : > { %v1560_v8 = vunpack.i.h.bf16 %v1558_v27  ;;  %v1559_v9 = vunpack.i.l.bf16 %v1558_v27  ;;  %1008 = vmatmul.mubr.bf16.vlgmr.msra.gmra.mrb[0].mxu0 %v1867_v24 }
 0x1ea   : > { %1016 = vmatprep.subr.bf16.mxu0 %v940_v48  ;;  %1048 = vmatprep.mubr.bf16.mxu0 %v2353_v20 }
 0x1eb   : > { %1017 = vmatpush1.bf16.msra.mxu0 %v939_v41  ;;  %v929_v54 = vsel %vm926_vm9, %v1559_v9, %v1564_v53  ;;  %v930_v63 = vsel %vm926_vm9, %v1560_v8, %v1565_v3  ;;  %1090 = vmatmul.mubr.bf16.vlgmr.msra.gmra.mrb[12].mxu1 %v1867_v24 }
 0x1ec   : > { %v1568_v40 = vpop.permute.xlu1 %1567  ;;  %v943_v13 = vpack.c.bf16 %v930_v63, %v929_v54  ;;  %1293 = vmatpush3.bf16.msra.mxu1 %v941_v50  ;;  %1296 = vmatprep.mubr.msk.bf16.mxu1 %vm1652_vm10, %v1651_v15 }
 0x1ed   : > { %v1570_v37 = vunpack.i.h.bf16 %v1568_v40  ;;  %v1569_v5 = vunpack.i.l.bf16 %v1568_v40  ;;  %1294 = vmatprep.subr.bf16.mxu1 %v1651_v15 }
 0x1ee   : > { %1018 = vmatprep.subr.bf16.mxu0 %v943_v13 }
 0x1ef   : > { %v933_v21 = vsel %vm926_vm9, %v1569_v5, %v1559_v9  ;;  %v934_v36 = vsel %vm926_vm9, %v1570_v37, %v1560_v8  ;;  %v937_v16 = vsel %vm926_vm9, %v1564_v53, %v1569_v5  ;;  %v938_v24 = vsel %vm926_vm9, %v1565_v3, %v1570_v37 }
 0x1f0   : > { %v942_v0 = vpack.c.bf16 %v934_v36, %v933_v21  ;;  %v944_v52 = vpack.c.bf16 %v938_v24, %v937_v16 }
 0x1f2   : > { %1019 = vmatpush1.bf16.msra.mxu0 %v942_v0  ;;  %1295 = vmatpush3.bf16.msra.mxu1 %v944_v52 }
 0x1f5   : > { %1247 = vmatmul.mubr.msk.bf16.vlgmr.msra.gmra.mrb[0].mxu0 %vm971_vm11, %v1869_v25  ;;  %1297 = vmatmul.mubr.msk.bf16.vlgmr.msra.gmra.mrb[16].mxu1 %vm971_vm11, %v1869_v25  ;;  %v950_v18 = vpop.permute.xlu0 %949 }
 0x2be   : > { %v1273_v44 = vpop.f32.mrb[12].mxu1 }
 0x2bf   : > { %v1274_v17 = vpop.f32.mrb[13].mxu1 }
 0x2c0   : > { %v1275_v59 = vadd.f32 %v1274_v17, %v1273_v44  ;;  %v1276_v31 = vpop.f32.mrb[14].mxu1 }
 0x2c1   : > { %v1277_v42 = vpop.f32.mrb[15].mxu1 }
 0x2c2   : > { %v1092_v33 = vadd.f32 %v1275_v59, %v950_v18 }
 0x2c8   : > { %v1050_v2 = vpop.f32.mrb[0].mxu0  ;;  %v1131_v43 = vpop.f32.mrb[16].mxu1 }
 0x2c9   : > { %v1300_v61 = vadd.f32 %v1050_v2, %v950_v18  ;;  %v1132_v11 = vadd.f32 %v1131_v43, %v1092_v33  ;;  %v1052_v58 = vpop.f32.mrb[1].mxu0  ;;  %v1298_v23 = vpop.f32.mrb[17].mxu1 }
 0x2ca   : > { %v1301_v51 = vadd.f32 %v1052_v58, %v950_v18  ;;  %v1054_v25 = vpop.f32.mrb[2].mxu0  ;;  %v1134_v46 = vpop.f32.mrb[18].mxu1 }
 0x2cb   : > { %1142 = vst [vmem:[%s271_s30 + $0x8] sm:$0xf] %v1132_v11  ;;  %v1055_v28 = vpop.f32.mrb[3].mxu0  ;;  %v1299_v55 = vpop.f32.mrb[19].mxu1 }
 0x2cc   : > { %v1139_v38 = vcombine.low %v1300_v61, %v1301_v51 }
 0x2ce   : > { %1141 = vst [vmem:[%s271_s30] sm:$0xff] %v1139_v38 }
 0x2cf PF: > { %s16_s21 = sadd.s32 1, %s1639_s21  }
 0x2d0   : > { %p13_p4 = scmp.ge.s32.totalorder %s16_s21, 4  }
 0x2d2   :  { %15 = sbr.rel (!%p13_p4) target bundleno = 1 (0x1), region = 77 }

</bundles_post_ra>
